<compile_context>
chip_gen: v7x
topology: tpu7x:2x2x1
jax: 0.10.0
libtpu: 0.0.40
codegen_flags: <defaults>
</compile_context>

<pallas_src>
import functools

import jax
import jax.numpy as jnp
from jax.experimental import pallas as pl
from jax.experimental.pallas import tpu as pltpu


def _ada_gcn_kernel(x_ref, w_ref, a_ref, b_ref, o_ref):
    # x_ref: (N, B*F)          node-major activations, lane-dense
    # w_ref: (B*F, B*F)        block-diagonal weight  (I_B kron W)
    # a_ref: (N, N)            gated adjacency, pre-scaled by 1/N
    # b_ref: (1, B*F)          bias tiled across the batch slices
    # o_ref: (N, B*F)
    xw = jnp.dot(x_ref[...], w_ref[...], preferred_element_type=jnp.float32)
    agg = jnp.dot(a_ref[...], xw, preferred_element_type=jnp.float32)
    o_ref[...] = (agg + b_ref[...]).astype(o_ref.dtype)


def ada_gcn_layer(x_nbf, w_big, adj_scaled, bias_big):
    """One AdaGCNConv layer on the lane-dense (N, B*F) layout."""
    N, BF = x_nbf.shape
    return pl.pallas_call(
        _ada_gcn_kernel,
        out_shape=jax.ShapeDtypeStruct((N, BF), x_nbf.dtype),
        in_specs=[
            pl.BlockSpec(memory_space=pltpu.MemorySpace.VMEM),  # x
            pl.BlockSpec(memory_space=pltpu.MemorySpace.VMEM),  # block-diag W
            pl.BlockSpec(memory_space=pltpu.MemorySpace.VMEM),  # adjacency / N
            pl.BlockSpec(memory_space=pltpu.MemorySpace.VMEM),  # bias
        ],
        out_specs=pl.BlockSpec(memory_space=pltpu.MemorySpace.VMEM),
    )(x_nbf, w_big, adj_scaled, bias_big)


def gumbel_hard_adjacency(key, logits, num_nodes, tau=1.0):
    """torch.nn.functional.gumbel_softmax(logits, hard=True)[:, 0] as (N, N).

    Forward value of the hard straight-through estimator is the one-hot argmax
    of (logits + Gumbel noise) / tau; only column 0 (the edge "keep" gate) is
    used.  Edge e = i*N + j has target i, source j, so reshape gives A[i, j].
    """
    g = jax.random.gumbel(key, logits.shape, dtype=logits.dtype)
    y = (logits + g) / tau
    z0 = (jnp.argmax(y, axis=-1) == 0).astype(logits.dtype)
    return z0.reshape(num_nodes, num_nodes)


def init_graph_embedding_params(key, num_nodes, seq_len):
    """Deterministic parameter init matching AdaGCNConv.__init__ shapes."""
    # glorot: uniform(-a, a), a = sqrt(6 / (fan_in + fan_out)), weight (F, F)
    a = (6.0 / (seq_len + seq_len)) ** 0.5
    weight = jax.random.uniform(key, (seq_len, seq_len), jnp.float32, -a, a)
    bias = jnp.zeros((seq_len,), jnp.float32)           # zeros(bias)
    # init_method='all': logits[:, 0] = 0.8, logits[:, 1] = 0
    logits = jnp.stack(
        [0.8 * jnp.ones((num_nodes * num_nodes,), jnp.float32),
         jnp.zeros((num_nodes * num_nodes,), jnp.float32)], axis=1)
    return dict(weight=weight, bias=bias, logits=logits)


@functools.partial(jax.jit, static_argnames=("num_levels",))
def graph_embedding_forward(x, params, key, num_levels=1):
    """x: (B, seq_len, num_nodes) -> (B, seq_len, num_nodes)."""
    B, F, N = x.shape
    # (B, F, N) -> (N, B, F) -> (N, B*F): node-major, lane-dense layout.
    h = jnp.transpose(x, (2, 0, 1)).reshape(N, B * F)
    # Block-diagonal weight so h @ w_big applies W within each batch slice.
    w_big = jnp.kron(jnp.eye(B, dtype=params["weight"].dtype), params["weight"])
    bias_big = jnp.tile(params["bias"].reshape(1, F), (1, B))
    inv_n = 1.0 / N
    for lvl in range(num_levels):
        # PyTorch resamples the gumbel gate at every forward / level.
        adj = gumbel_hard_adjacency(
            jax.random.fold_in(key, lvl), params["logits"], N)
        # gcn_norm on the ungated fully connected graph (no self-loop add)
        # gives a uniform 1/N edge weight; fold it into the adjacency here.
        h = ada_gcn_layer(h, w_big, adj * inv_n, bias_big)
    # (N, B*F) -> (N, B, F) -> (B, F, N)
    return jnp.transpose(h.reshape(N, B, F), (1, 2, 0))


if __name__ == "__main__":
    num_nodes = 8
    seq_len = 32
    batch = 2

    root = jax.random.PRNGKey(0)
    k_param, k_x, k_gumbel = jax.random.split(root, 3)

    params = init_graph_embedding_params(k_param, num_nodes, seq_len)
    x = jax.random.normal(k_x, (batch, seq_len, num_nodes), dtype=jnp.float32)

    out = graph_embedding_forward(x, params, k_gumbel, num_levels=1)
    out = jax.block_until_ready(out)

    assert out.shape == (batch, seq_len, num_nodes), out.shape
    assert out.dtype == jnp.float32

    # Pure-JAX reference of the same math (same gumbel draw) for a sanity check.
    adj_ref = gumbel_hard_adjacency(
        jax.random.fold_in(k_gumbel, 0), params["logits"], num_nodes)
    h_ref = jnp.transpose(x, (0, 2, 1))                          # (B, N, F)
    xw_ref = jnp.einsum("bnf,fg->bng", h_ref, params["weight"])
    agg_ref = jnp.einsum("ij,bjg->big", adj_ref, xw_ref) / num_nodes
    ref = jnp.transpose(agg_ref + params["bias"], (0, 2, 1))     # (B, F, N)
    assert jnp.allclose(out, ref, atol=1e-5, rtol=1e-5), \
        float(jnp.max(jnp.abs(out - ref)))

    print("KERNEL_OK")
</pallas_src>

<mosaic_0001>
module attributes {stable_mosaic.version = 11 : i64} {
  func.func @_ada_gcn_kernel(%arg0: memref<8x64xf32, #tpu.memory_space<vmem>>, %arg1: memref<64x64xf32, #tpu.memory_space<vmem>>, %arg2: memref<8x8xf32, #tpu.memory_space<vmem>>, %arg3: memref<1x64xf32, #tpu.memory_space<vmem>>, %arg4: memref<8x64xf32, #tpu.memory_space<vmem>>) attributes {dimension_semantics = [], scalar_prefetch = 0 : i64, scratch_operands = 0 : i64, tpu.core_type = #tpu.core_type<tc>} {
    %c0 = arith.constant 0 : index
    %c0_0 = arith.constant 0 : index
    %0 = vector.load %arg0[%c0, %c0_0] : memref<8x64xf32, #tpu.memory_space<vmem>>, vector<8x64xf32>
    %c0_1 = arith.constant 0 : index
    %c0_2 = arith.constant 0 : index
    %1 = vector.load %arg1[%c0_1, %c0_2] : memref<64x64xf32, #tpu.memory_space<vmem>>, vector<64x64xf32>
    %cst = arith.constant dense<0.000000e+00> : vector<8x64xf32>
    %2 = tpu.matmul %0, %1, %cst {dimension_numbers = #tpu.dot_dimension_numbers<[1], [0], [0], [1], [0, 0, 1, 1], [], []>} : vector<8x64xf32>, vector<64x64xf32>, vector<8x64xf32> -> vector<8x64xf32>
    %c0_3 = arith.constant 0 : index
    %c0_4 = arith.constant 0 : index
    %3 = vector.load %arg2[%c0_3, %c0_4] : memref<8x8xf32, #tpu.memory_space<vmem>>, vector<8x8xf32>
    %cst_5 = arith.constant dense<0.000000e+00> : vector<8x64xf32>
    %4 = tpu.matmul %3, %2, %cst_5 {dimension_numbers = #tpu.dot_dimension_numbers<[1], [0], [0], [1], [0, 0, 1, 1], [], []>} : vector<8x8xf32>, vector<8x64xf32>, vector<8x64xf32> -> vector<8x64xf32>
    %c0_6 = arith.constant 0 : index
    %c0_7 = arith.constant 0 : index
    %5 = vector.load %arg3[%c0_6, %c0_7] : memref<1x64xf32, #tpu.memory_space<vmem>>, vector<1x64xf32>
    %6 = vector.broadcast %5 : vector<1x64xf32> to vector<8x64xf32>
    %7 = arith.addf %4, %6 : vector<8x64xf32>
    %c0_8 = arith.constant 0 : index
    %c0_9 = arith.constant 0 : index
    %8 = vector.load %arg4[%c0_8, %c0_9] : memref<8x64xf32, #tpu.memory_space<vmem>>, vector<8x64xf32>
    tpu.vector_store %arg4[%c0_8, %c0_9], %7 {strides = array<i32>} : memref<8x64xf32, #tpu.memory_space<vmem>>, vector<8x64xf32>,
    return
  }
}

</mosaic_0001>

<bundles_post_ra>
// kernel: graph_embedding_forward.3
= control target key start
LH: loop header
LB: loop body
LE: loop exit
PB: predicated region body
PF: predicated region fallthrough
CT: control target
= control target key end

     0   :  { %v240_v0 = vmov 0.0|0.0   ;;  %vm241_vm0 = vmmov 0   ;;  %v242_v4 = vmov 0.0   ;;  %vm26_vm1 = vcmask 523264   ;;  %s304_s1 = inlined_call_operand.vmem [shape: f32[64,64], index: 1, kind: input, shape index: {}]   ;;  %s305_s0 = inlined_call_operand.vmem [shape: f32[8,64], index: 0, kind: input, shape index: {}]   ;;  %s306_s2 = inlined_call_operand.vmem [shape: f32[8,8], index: 2, kind: input, shape index: {}]   ;;  %s307_s3 = inlined_call_operand.vmem [shape: f32[1,64], index: 3, kind: input, shape index: {}]   ;;  %s308_s4 = inlined_call_operand.vmem [shape: f32[8,64], index: 4, kind: output, shape index: {}]  }
   0x1   :  { %225 = vmatprep.subr.bf16.mxu0 %v240_v0  ;;  %v18_v1 = vld [vmem:[%s304_s1] sm:$0xff]  ;;  %v19_v2 = vld [vmem:[%s304_s1 + $0x8] sm:$0xff]  ;;  %v20_v3 = vld [vmem:[%s304_s1 + $0x10] sm:$0xff]  ;;  %217 = vmatprep.mubr.msk.f32.mxu0 %vm241_vm0, %v242_v4  ;;  %vm108_vm2 = vcmask 64512  }
   0x2   :  { %v226_v5 = vpack.c.bf16 %v19_v2, %v18_v1  ;;  %v21_v6 = vld [vmem:[%s304_s1 + $0x18] sm:$0xff]  ;;  %220 = vmatprep.subr.mxu1 %v242_v4  ;;  %222 = vmatprep.mubr.msk.f32.mxu1 %vm241_vm0, %v242_v4  ;;  %v22_v8 = vld [vmem:[%s304_s1 + $0x20] sm:$0xff]  ;;  %v23_v9 = vld [vmem:[%s304_s1 + $0x28] sm:$0xff] }
   0x3   :  { %v229_v7 = vpack.c.bf16 %v21_v6, %v20_v3  ;;  %v232_v10 = vpack.c.bf16 %v23_v9, %v22_v8  ;;  %v24_v11 = vld [vmem:[%s304_s1 + $0x30] sm:$0xff]  ;;  %v25_v12 = vld [vmem:[%s304_s1 + $0x38] sm:$0xff]  ;;  %v17_v14 = vld [vmem:[%s305_s0] sm:$0xff] }
   0x4   :  { %227 = vmatpush3.bf16.msra.mxu0 %v226_v5  ;;  %v235_v13 = vpack.c.bf16 %v25_v12, %v24_v11  ;;  %v100_v15 = vld [vmem:[%s306_s2] sm:$0xff] }
   0x5   :  { %228 = vmatprep.subr.bf16.mxu0 %v240_v0  ;;  %v188_v18 = vld [vmem:[%s307_s3] ss:$0 sm:$0xff] }
   0x8   :  { %230 = vmatpush3.bf16.msra.mxu0 %v229_v7 }
   0x9   :  { %231 = vmatprep.subr.bf16.mxu0 %v240_v0 }
   0xc   :  { %233 = vmatpush3.bf16.msra.mxu0 %v232_v10 }
   0xd   :  { %234 = vmatprep.subr.bf16.mxu0 %v240_v0 }
  0x10   :  { %236 = vmatpush3.bf16.msra.mxu0 %v235_v13 }
  0x13   :  { %218 = vmatmul.mubr.msk.f32.vlgmr.msra.gmra.mrb[0].mxu0 %vm26_vm1, %v17_v14 }
  0xe6   :  { %v96_v16 = vpop.f32.mrb[0].mxu0 }
  0xe7   :  { %v219_v17 = vpop.f32.mrb[1].mxu0  ;;  %221 = vmatpush3.msra.mxu1 %v96_v16 }
  0xe8   :  { %223 = vmatmul.mubr.msk.f32.vlgmr.msra.gmra.mrb[0].mxu1 %vm108_vm2, %v100_v15 }
 0x1bb   :  { %v178_v19 = vpop.f32.mrb[0].mxu1 }
 0x1bc   :  { %v179_v20 = vadd.f32 %v188_v18, %v178_v19  ;;  %v224_v21 = vpop.f32.mrb[1].mxu1 }
 0x1be   :  { %182 = vst.msk [vmem:[%s308_s4] sm:$0xff] %vm26_vm1, %v179_v20 }

</bundles_post_ra>
